<compile_context>
chip_gen: v7x
topology: tpu7x:2x2x1
jax: 0.10.0
libtpu: 0.0.40
codegen_flags: <defaults>
</compile_context>

<pallas_src>
import functools

import jax
import jax.numpy as jnp
from jax.experimental import pallas as pl
from jax.experimental.pallas import tpu as pltpu


def _round_up(n, m):
    return ((n + m - 1) // m) * m


def _num_tensorcores():
    # v7x has 2 TensorCores per chip; v5e/v6e have 1.
    try:
        kind = jax.devices()[0].device_kind.lower()
        if "v7" in kind:
            return 2
    except Exception:
        pass
    return 1


def _mlp_kernel(x_ref, w1_ref, b_ref, w2_ref, w3_ref, o_ref, *, h1p, h2p, doutp):
    # x_ref : (bm, Din)      -- contraction dim left unpadded (tiny K)
    # w1_ref: (Din, H1_p)    w2_ref: (H1_p, H2_p)    w3_ref: (H2_p, Dout_p)
    # b_ref : (3, Hmax)      -- packed biases, one row per layer
    # o_ref : (bm, Dout_p)
    x = x_ref[...]
    b1 = b_ref[0:1, :h1p]
    b2 = b_ref[1:2, :h2p]
    b3 = b_ref[2:3, :doutp]

    h1 = jnp.dot(x, w1_ref[...], preferred_element_type=jnp.float32) + b1
    h1 = jnp.maximum(h1, 0.0)
    h2 = jnp.dot(h1, w2_ref[...], preferred_element_type=jnp.float32) + b2
    h2 = jnp.maximum(h2, 0.0)
    out = jnp.dot(h2, w3_ref[...], preferred_element_type=jnp.float32) + b3
    o_ref[...] = out.astype(o_ref.dtype)


def prepare_params(w1, b1, w2, b2, w3, b3):
    """One-time parameter layout (call ONCE, outside the per-step path).

    nn.Linear weights (out_features, in_features) are transposed to
    (in, out) and lane-padded to multiples of 128; biases are packed into a
    single (3, Hmax) array. The contraction dim of W1 (= in_features) is NOT
    padded, matching the unpadded x blocks.
    """
    f32 = jnp.float32
    H1, Din = w1.shape
    H2 = w2.shape[0]
    Dout = w3.shape[0]
    H1_p, H2_p, Dout_p = (_round_up(d, 128) for d in (H1, H2, Dout))
    Hmax = max(H1_p, H2_p, Dout_p)

    w1_p = jnp.pad(w1.T.astype(f32), ((0, 0), (0, H1_p - H1)))               # (Din, H1_p)
    w2_p = jnp.pad(w2.T.astype(f32), ((0, H1_p - H1), (0, H2_p - H2)))       # (H1_p, H2_p)
    w3_p = jnp.pad(w3.T.astype(f32), ((0, H2_p - H2), (0, Dout_p - Dout)))   # (H2_p, Dout_p)

    b_pack = jnp.zeros((3, Hmax), f32)
    b_pack = b_pack.at[0, :H1].set(b1.astype(f32))
    b_pack = b_pack.at[1, :H2].set(b2.astype(f32))
    b_pack = b_pack.at[2, :Dout].set(b3.astype(f32))

    meta = dict(Din=Din, Dout=Dout, H1_p=H1_p, H2_p=H2_p, Dout_p=Dout_p, Hmax=Hmax)
    return (w1_p, b_pack, w2_p, w3_p), meta


def neuralnet_forward(x, packed_params, meta, *, max_block_rows=512):
    """Fused 3-layer MLP forward.  x: (N, Din) -> (N, Dout)."""
    w1_p, b_pack, w2_p, w3_p = packed_params
    N, Din = x.shape
    assert Din == meta["Din"], (Din, meta["Din"])
    H1_p, H2_p, Dout_p, Hmax = meta["H1_p"], meta["H2_p"], meta["Dout_p"], meta["Hmax"]
    Dout = meta["Dout"]

    # Pick block rows per generation: one big block per TensorCore (cap 512).
    num_tc = _num_tensorcores()
    per_core = -(-N // num_tc)
    bm = min(max_block_rows, max(8, _round_up(per_core, 8)))
    N_p = _round_up(N, bm)

    x_in = x.astype(jnp.float32)
    if N_p != N:
        x_in = jnp.pad(x_in, ((0, N_p - N), (0, 0)))   # pad rows only; K untouched

    kernel = functools.partial(_mlp_kernel, h1p=H1_p, h2p=H2_p, doutp=Dout_p)

    out_p = pl.pallas_call(
        kernel,
        out_shape=jax.ShapeDtypeStruct((N_p, Dout_p), jnp.float32),
        grid_spec=pltpu.PrefetchScalarGridSpec(
            num_scalar_prefetch=0,
            grid=(N_p // bm,),
            in_specs=[
                pl.BlockSpec((bm, Din), lambda i: (i, 0)),       # x row block (K unpadded)
                pl.BlockSpec((Din, H1_p), lambda i: (0, 0)),     # W1 (VMEM-resident)
                pl.BlockSpec((3, Hmax), lambda i: (0, 0)),       # packed biases
                pl.BlockSpec((H1_p, H2_p), lambda i: (0, 0)),    # W2
                pl.BlockSpec((H2_p, Dout_p), lambda i: (0, 0)),  # W3
            ],
            out_specs=pl.BlockSpec((bm, Dout_p), lambda i: (i, 0)),
        ),
        compiler_params=pltpu.CompilerParams(
            dimension_semantics=("parallel",),
            vmem_limit_bytes=16 * 1024 * 1024,
        ),
    )(x_in, w1_p, b_pack, w2_p, w3_p)

    # Slice off row / lane padding -> exact (N, Dout) result.
    return out_p[:N, :Dout]


def reference_forward(x, w1, b1, w2, b2, w3, b3):
    """Pure-JAX reference with PyTorch nn.Linear semantics."""
    h1 = jnp.maximum(x @ w1.T + b1, 0.0)
    h2 = jnp.maximum(h1 @ w2.T + b2, 0.0)
    return h2 @ w3.T + b3


if __name__ == "__main__":
    # Small config consistent with the module:
    #   in_features=4, hidden_size1=64, hidden_size2=32, out_features=2.
    N, Din, H1, H2, Dout = 256, 4, 64, 32, 2

    key = jax.random.PRNGKey(0)
    kx, kw1, kb1, kw2, kb2, kw3, kb3 = jax.random.split(key, 7)

    x = jax.random.normal(kx, (N, Din), dtype=jnp.float32)
    # Deterministic synthetic parameters (nn.Linear weight/bias layouts).
    w1 = 0.1 * jax.random.normal(kw1, (H1, Din), dtype=jnp.float32)
    b1 = 0.1 * jax.random.normal(kb1, (H1,), dtype=jnp.float32)
    w2 = 0.1 * jax.random.normal(kw2, (H2, H1), dtype=jnp.float32)
    b2 = 0.1 * jax.random.normal(kb2, (H2,), dtype=jnp.float32)
    w3 = 0.1 * jax.random.normal(kw3, (Dout, H2), dtype=jnp.float32)
    b3 = 0.1 * jax.random.normal(kb3, (Dout,), dtype=jnp.float32)

    # One-time parameter layout (hoisted out of the per-call path).
    packed_params, meta = prepare_params(w1, b1, w2, b2, w3, b3)
    packed_params = jax.block_until_ready(packed_params)

    out = neuralnet_forward(x, packed_params, meta)
    out = jax.block_until_ready(out)

    ref = jax.block_until_ready(reference_forward(x, w1, b1, w2, b2, w3, b3))
    assert out.shape == (N, Dout), out.shape
    assert jnp.allclose(out, ref, atol=1e-4, rtol=1e-4), float(jnp.max(jnp.abs(out - ref)))

    print("KERNEL_OK")
</pallas_src>

<mosaic_0001>
module attributes {stable_mosaic.version = 11 : i64} {
  func.func @_mlp_kernel(%arg0: i32, %arg1: memref<256x4xf32, #tpu.memory_space<vmem>>, %arg2: memref<4x128xf32, #tpu.memory_space<vmem>>, %arg3: memref<3x128xf32, #tpu.memory_space<vmem>>, %arg4: memref<128x128xf32, #tpu.memory_space<vmem>>, %arg5: memref<128x128xf32, #tpu.memory_space<vmem>>, %arg6: memref<256x128xf32, #tpu.memory_space<vmem>>) attributes {dimension_semantics = [#tpu.dimension_semantics<parallel>], iteration_bounds = array<i64: 1>, scalar_prefetch = 0 : i64, scratch_operands = 0 : i64, tpu.core_type = #tpu.core_type<tc>, window_params = [{transform_indices = @transform_0, window_bounds = array<i64: 256, 4>}, {pipeline_mode = #tpu.pipeline_mode<synchronous>, transform_indices = @transform_1, window_bounds = array<i64: 4, 128>}, {pipeline_mode = #tpu.pipeline_mode<synchronous>, transform_indices = @transform_2, window_bounds = array<i64: 3, 128>}, {pipeline_mode = #tpu.pipeline_mode<synchronous>, transform_indices = @transform_3, window_bounds = array<i64: 128, 128>}, {pipeline_mode = #tpu.pipeline_mode<synchronous>, transform_indices = @transform_4, window_bounds = array<i64: 128, 128>}, {transform_indices = @transform_5, window_bounds = array<i64: 256, 128>}]} {
    %c0 = arith.constant 0 : index
    %c0_0 = arith.constant 0 : index
    %0 = vector.load %arg1[%c0, %c0_0] : memref<256x4xf32, #tpu.memory_space<vmem>>, vector<256x4xf32>
    %c0_1 = arith.constant 0 : index
    %c0_2 = arith.constant 0 : index
    %1 = vector.load %arg3[%c0_1, %c0_2] : memref<3x128xf32, #tpu.memory_space<vmem>>, vector<1x128xf32>
    %c1 = arith.constant 1 : index
    %c0_3 = arith.constant 0 : index
    %2 = vector.load %arg3[%c1, %c0_3] : memref<3x128xf32, #tpu.memory_space<vmem>>, vector<1x128xf32>
    %c2 = arith.constant 2 : index
    %c0_4 = arith.constant 0 : index
    %3 = vector.load %arg3[%c2, %c0_4] : memref<3x128xf32, #tpu.memory_space<vmem>>, vector<1x128xf32>
    %c0_5 = arith.constant 0 : index
    %c0_6 = arith.constant 0 : index
    %4 = vector.load %arg2[%c0_5, %c0_6] : memref<4x128xf32, #tpu.memory_space<vmem>>, vector<4x128xf32>
    %cst = arith.constant dense<0.000000e+00> : vector<256x128xf32>
    %5 = tpu.matmul %0, %4, %cst {dimension_numbers = #tpu.dot_dimension_numbers<[1], [0], [0], [1], [0, 0, 1, 1], [], []>} : vector<256x4xf32>, vector<4x128xf32>, vector<256x128xf32> -> vector<256x128xf32>
    %6 = vector.broadcast %1 : vector<1x128xf32> to vector<256x128xf32>
    %7 = arith.addf %5, %6 : vector<256x128xf32>
    %cst_7 = arith.constant 0.000000e+00 : f32
    %8 = vector.broadcast %cst_7 : f32 to vector<256x128xf32>
    %9 = arith.maximumf %7, %8 : vector<256x128xf32>
    %c0_8 = arith.constant 0 : index
    %c0_9 = arith.constant 0 : index
    %10 = vector.load %arg4[%c0_8, %c0_9] : memref<128x128xf32, #tpu.memory_space<vmem>>, vector<128x128xf32>
    %cst_10 = arith.constant dense<0.000000e+00> : vector<256x128xf32>
    %11 = tpu.matmul %9, %10, %cst_10 {dimension_numbers = #tpu.dot_dimension_numbers<[1], [0], [0], [1], [0, 0, 1, 1], [], []>} : vector<256x128xf32>, vector<128x128xf32>, vector<256x128xf32> -> vector<256x128xf32>
    %12 = vector.broadcast %2 : vector<1x128xf32> to vector<256x128xf32>
    %13 = arith.addf %11, %12 : vector<256x128xf32>
    %cst_11 = arith.constant 0.000000e+00 : f32
    %14 = vector.broadcast %cst_11 : f32 to vector<256x128xf32>
    %15 = arith.maximumf %13, %14 : vector<256x128xf32>
    %c0_12 = arith.constant 0 : index
    %c0_13 = arith.constant 0 : index
    %16 = vector.load %arg5[%c0_12, %c0_13] : memref<128x128xf32, #tpu.memory_space<vmem>>, vector<128x128xf32>
    %cst_14 = arith.constant dense<0.000000e+00> : vector<256x128xf32>
    %17 = tpu.matmul %15, %16, %cst_14 {dimension_numbers = #tpu.dot_dimension_numbers<[1], [0], [0], [1], [0, 0, 1, 1], [], []>} : vector<256x128xf32>, vector<128x128xf32>, vector<256x128xf32> -> vector<256x128xf32>
    %18 = vector.broadcast %3 : vector<1x128xf32> to vector<256x128xf32>
    %19 = arith.addf %17, %18 : vector<256x128xf32>
    %c0_15 = arith.constant 0 : index
    %c0_16 = arith.constant 0 : index
    %20 = vector.load %arg6[%c0_15, %c0_16] : memref<256x128xf32, #tpu.memory_space<vmem>>, vector<256x128xf32>
    tpu.vector_store %arg6[%c0_15, %c0_16], %19 {strides = array<i32>} : memref<256x128xf32, #tpu.memory_space<vmem>>, vector<256x128xf32>,
    return
  }
  func.func @transform_0(%arg0: i32) -> (i32, i32) {
    %c0_i32 = arith.constant 0 : i32
    %c0_i32_0 = arith.constant 0 : i32
    return %arg0, %c0_i32 : i32, i32
  }
  func.func @transform_1(%arg0: i32) -> (i32, i32) {
    %c0_i32 = arith.constant 0 : i32
    %c0_i32_0 = arith.constant 0 : i32
    %c0_i32_1 = arith.constant 0 : i32
    return %c0_i32, %c0_i32_0 : i32, i32
  }
  func.func @transform_2(%arg0: i32) -> (i32, i32) {
    %c0_i32 = arith.constant 0 : i32
    %c0_i32_0 = arith.constant 0 : i32
    %c0_i32_1 = arith.constant 0 : i32
    return %c0_i32, %c0_i32_0 : i32, i32
  }
  func.func @transform_3(%arg0: i32) -> (i32, i32) {
    %c0_i32 = arith.constant 0 : i32
    %c0_i32_0 = arith.constant 0 : i32
    %c0_i32_1 = arith.constant 0 : i32
    return %c0_i32, %c0_i32_0 : i32, i32
  }
  func.func @transform_4(%arg0: i32) -> (i32, i32) {
    %c0_i32 = arith.constant 0 : i32
    %c0_i32_0 = arith.constant 0 : i32
    %c0_i32_1 = arith.constant 0 : i32
    return %c0_i32, %c0_i32_0 : i32, i32
  }
  func.func @transform_5(%arg0: i32) -> (i32, i32) {
    %c0_i32 = arith.constant 0 : i32
    %c0_i32_0 = arith.constant 0 : i32
    return %arg0, %c0_i32 : i32, i32
  }
}

</mosaic_0001>

<bundles_post_ra>
// kernel: tpu_custom_call.1
= control target key start
LH: loop header
LB: loop body
LE: loop exit
PB: predicated region body
PF: predicated region fallthrough
CT: control target
= control target key end

     0   :  { %vm158_vm0 = vcmask 1043456   ;;  %vm61_vm1 = vcmask 31744   ;;  %s1852_s0 = inlined_call_operand.vmem [shape: f32[256,4], index: 0, kind: input, shape index: {}]   ;;  %s1853_s1 = inlined_call_operand.vmem [shape: f32[4,128], index: 1, kind: input, shape index: {}]   ;;  %s1854_s2 = inlined_call_operand.vmem [shape: f32[3,128], index: 2, kind: input, shape index: {}]   ;;  %s1855_s3 = inlined_call_operand.vmem [shape: f32[128,128], index: 3, kind: input, shape index: {}]   ;;  %s1856_s4 = inlined_call_operand.vmem [shape: f32[128,128], index: 4, kind: input, shape index: {}]   ;;  %s1857_s5 = inlined_call_operand.hbm [shape: f32[256,128], index: 5, kind: output, shape index: {}]  }
   0x1   :  { %v56_v0 = vld [vmem:[%s1853_s1] sm:$0xf]  ;;  %v22_v2 = vld [vmem:[%s1852_s0 + $0x8] sm:$0xff]  ;;  %v23_v3 = vld [vmem:[%s1852_s0 + $0x10] sm:$0xff] }
   0x2   :  { %v21_v1 = vld [vmem:[%s1852_s0] sm:$0xff]  ;;  %1154 = vmatprep.subr.msk.mxu0 %vm158_vm0, %v56_v0  ;;  %1428 = vmatprep.subr.msk.mxu1 %vm158_vm0, %v56_v0  ;;  %v24_v4 = vld [vmem:[%s1852_s0 + $0x18] sm:$0xff]  ;;  %v38_v7 = vld [vmem:[%s1852_s0 + $0x88] sm:$0xff] }
   0x3   :  { %1156 = vmatprep.mubr.msk.f32.mxu0 %vm61_vm1, %v21_v1  ;;  %1155 = vmatpush3.msk.msra.mxu0 %vm158_vm0, %v56_v0  ;;  %v25_v5 = vld [vmem:[%s1852_s0 + $0x20] sm:$0xff]  ;;  %v39_v8 = vld [vmem:[%s1852_s0 + $0x90] sm:$0xff]  ;;  %v26_v9 = vld [vmem:[%s1852_s0 + $0x28] sm:$0xff] }
   0x4   :  { %1157 = vmatmul.mubr.msk.f32.vlgmr.msra.gmra.mrb[0].mxu0 %vm61_vm1, %v22_v2  ;;  %1429 = vmatpush3.msk.msra.mxu1 %vm158_vm0, %v56_v0  ;;  %v37_v6 = vld [vmem:[%s1852_s0 + $0x80] sm:$0xff]  ;;  %v40_v10 = vld [vmem:[%s1852_s0 + $0x98] sm:$0xff]  ;;  %v27_v11 = vld [vmem:[%s1852_s0 + $0x30] sm:$0xff] }
   0x5   :  { %1159 = vmatprep.mubr.msk.f32.mxu0 %vm61_vm1, %v23_v3  ;;  %1180 = vmatprep.mubr.msk.f32.mxu1 %vm61_vm1, %v37_v6  ;;  %v41_v12 = vld [vmem:[%s1852_s0 + $0xa0] sm:$0xff]  ;;  %v420_v14 = vld [vmem:[%s1855_s3 + $0x8] sm:$0xff]  ;;  %v421_v15 = vld [vmem:[%s1855_s3 + $0x10] sm:$0xff] }
   0x6   :  { %1181 = vmatmul.mubr.msk.f32.vlgmr.msra.gmra.mrb[0].mxu1 %vm61_vm1, %v38_v7  ;;  %v419_v13 = vld [vmem:[%s1855_s3] sm:$0xff]  ;;  %v28_v16 = vld [vmem:[%s1852_s0 + $0x38] sm:$0xff]  ;;  %v42_v17 = vld [vmem:[%s1852_s0 + $0xa8] sm:$0xff] }
   0x7   :  { %1183 = vmatprep.mubr.msk.f32.mxu1 %vm61_vm1, %v39_v8  ;;  %v1364_v18 = vpack.c.bf16 %v420_v14, %v419_v13  ;;  %v422_v19 = vld [vmem:[%s1855_s3 + $0x18] sm:$0xff]  ;;  %v29_v20 = vld [vmem:[%s1852_s0 + $0x40] sm:$0xff]  ;;  %v43_v21 = vld [vmem:[%s1852_s0 + $0xb0] sm:$0xff] }
   0x8   :  { %1160 = vmatmul.mubr.msk.f32.gmra.mrb[2].mxu0 %vm61_vm1, %v24_v4  ;;  %v1368_v22 = vpack.c.bf16 %v422_v19, %v421_v15  ;;  %v423_v23 = vld [vmem:[%s1855_s3 + $0x20] sm:$0xff]  ;;  %v424_v24 = vld [vmem:[%s1855_s3 + $0x28] sm:$0xff] }
   0x9   :  { %1162 = vmatprep.mubr.msk.f32.mxu0 %vm61_vm1, %v25_v5  ;;  %1365 = vmatprep.subr.bf16.mxu1 %v1364_v18 }
   0xa   :  { %1184 = vmatmul.mubr.msk.f32.gmra.mrb[2].mxu1 %vm61_vm1, %v40_v10 }
   0xb   :  { %1186 = vmatprep.mubr.msk.f32.mxu1 %vm61_vm1, %v41_v12 }
   0xc   :  { %1163 = vmatmul.mubr.msk.f32.gmra.mrb[4].mxu0 %vm61_vm1, %v26_v9 }
   0xd   :  { %1165 = vmatprep.mubr.msk.f32.mxu0 %vm61_vm1, %v27_v11 }
   0xe   :  { %1187 = vmatmul.mubr.msk.f32.gmra.mrb[4].mxu1 %vm61_vm1, %v42_v17 }
  0x10   :  { %1166 = vmatmul.mubr.msk.f32.gmra.mrb[6].mxu0 %vm61_vm1, %v28_v16 }
  0x11   :  { %10 = vsyncpa [#allocation3], 0  ;;  %1168 = vmatprep.mubr.msk.f32.mxu0 %vm61_vm1, %v29_v20  ;;  %v30_v25 = vld [vmem:[%s1852_s0 + $0x48] sm:$0xff]  ;;  %1189 = vmatprep.mubr.msk.f32.mxu1 %vm61_vm1, %v43_v21  ;;  %v44_v26 = vld [vmem:[%s1852_s0 + $0xb8] sm:$0xff]  ;;  %v1372_v29 = vpack.c.bf16 %v424_v24, %v423_v23 }
  0x12   :  { %v31_v27 = vld [vmem:[%s1852_s0 + $0x50] sm:$0xff]  ;;  %v45_v28 = vld [vmem:[%s1852_s0 + $0xc0] sm:$0xff]  ;;  %1367 = vmatpush3.bf16.msra.mxu1 %v1364_v18  ;;  %v426_v31 = vld [vmem:[%s1855_s3 + $0x38] sm:$0xff] }
  0x13   :  { %1369 = vmatprep.subr.bf16.mxu1 %v1368_v22  ;;  %1190 = vmatmul.mubr.msk.f32.gmra.mrb[6].mxu1 %vm61_vm1, %v44_v26  ;;  %v425_v30 = vld [vmem:[%s1855_s3 + $0x30] sm:$0xff]  ;;  %v32_v32 = vld [vmem:[%s1852_s0 + $0x58] sm:$0xff]  ;;  %v46_v33 = vld [vmem:[%s1852_s0 + $0xc8] sm:$0xff] }
  0x14   :  { %1169 = vmatmul.mubr.msk.f32.gmra.mrb[8].mxu0 %vm61_vm1, %v30_v25  ;;  %1192 = vmatprep.mubr.msk.f32.mxu1 %vm61_vm1, %v45_v28  ;;  %v33_v34 = vld [vmem:[%s1852_s0 + $0x60] sm:$0xff]  ;;  %v47_v35 = vld [vmem:[%s1852_s0 + $0xd0] sm:$0xff]  ;;  %v1376_v36 = vpack.c.bf16 %v426_v31, %v425_v30  ;;  %v428_v38 = vld [vmem:[%s1855_s3 + $0x48] sm:$0xff] }
  0x15   :  { %1171 = vmatprep.mubr.msk.f32.mxu0 %vm61_vm1, %v31_v27  ;;  %v427_v37 = vld [vmem:[%s1855_s3 + $0x40] sm:$0xff]  ;;  %v34_v39 = vld [vmem:[%s1852_s0 + $0x68] sm:$0xff]  ;;  %v48_v40 = vld [vmem:[%s1852_s0 + $0xd8] sm:$0xff] }
  0x16   :  { %1371 = vmatpush3.bf16.msra.mxu1 %v1368_v22  ;;  %v35_v41 = vld [vmem:[%s1852_s0 + $0x70] sm:$0xff]  ;;  %v49_v42 = vld [vmem:[%s1852_s0 + $0xe0] sm:$0xff]  ;;  %v1380_v43 = vpack.c.bf16 %v428_v38, %v427_v37  ;;  %v430_v45 = vld [vmem:[%s1855_s3 + $0x58] sm:$0xff] }
  0x17   :  { %1373 = vmatprep.subr.bf16.mxu1 %v1372_v29  ;;  %1193 = vmatmul.mubr.msk.f32.gmra.mrb[8].mxu1 %vm61_vm1, %v46_v33  ;;  %v429_v44 = vld [vmem:[%s1855_s3 + $0x50] sm:$0xff]  ;;  %v36_v46 = vld [vmem:[%s1852_s0 + $0x78] sm:$0xff]  ;;  %v50_v47 = vld [vmem:[%s1852_s0 + $0xe8] sm:$0xff] }
  0x18   :  { %1172 = vmatmul.mubr.msk.f32.gmra.mrb[10].mxu0 %vm61_vm1, %v32_v32  ;;  %1195 = vmatprep.mubr.msk.f32.mxu1 %vm61_vm1, %v47_v35  ;;  %v51_v48 = vld [vmem:[%s1852_s0 + $0xf0] sm:$0xff]  ;;  %v1384_v49 = vpack.c.bf16 %v430_v45, %v429_v44  ;;  %v431_v50 = vld [vmem:[%s1855_s3 + $0x60] sm:$0xff]  ;;  %v432_v51 = vld [vmem:[%s1855_s3 + $0x68] sm:$0xff] }
  0x19   :  { %1174 = vmatprep.mubr.msk.f32.mxu0 %vm61_vm1, %v33_v34  ;;  %v52_v52 = vld [vmem:[%s1852_s0 + $0xf8] sm:$0xff]  ;;  %v1388_v53 = vpack.c.bf16 %v432_v51, %v431_v50  ;;  %v433_v54 = vld [vmem:[%s1855_s3 + $0x70] sm:$0xff]  ;;  %v696_v57 = vld [vmem:[%s1856_s4] sm:$0xff] }
  0x1a   :  { %1375 = vmatpush3.bf16.msra.mxu1 %v1372_v29  ;;  %v434_v55 = vld [vmem:[%s1855_s3 + $0x78] sm:$0xff]  ;;  %v697_v58 = vld [vmem:[%s1856_s4 + $0x8] sm:$0xff]  ;;  %v698_v59 = vld [vmem:[%s1856_s4 + $0x10] sm:$0xff] }
  0x1b   :  { %1377 = vmatprep.subr.bf16.mxu1 %v1376_v36  ;;  %1196 = vmatmul.mubr.msk.f32.gmra.mrb[10].mxu1 %vm61_vm1, %v48_v40  ;;  %v1392_v56 = vpack.c.bf16 %v434_v55, %v433_v54  ;;  %v1396_v60 = vpack.c.bf16 %v697_v58, %v696_v57  ;;  %v699_v61 = vld [vmem:[%s1856_s4 + $0x18] sm:$0xff]  ;;  %v700_v63 = vld [vmem:[%s1856_s4 + $0x20] sm:$0xff]  ;;  %v701_v0 = vld [vmem:[%s1856_s4 + $0x28] sm:$0xff] }
  0x1c   :  { %1175 = vmatmul.mubr.msk.f32.gmra.mrb[12].mxu0 %vm61_vm1, %v34_v39  ;;  %1198 = vmatprep.mubr.msk.f32.mxu1 %vm61_vm1, %v49_v42  ;;  %v1400_v62 = vpack.c.bf16 %v699_v61, %v698_v59  ;;  %v1404_v1 = vpack.c.bf16 %v701_v0, %v700_v63  ;;  %v702_v2 = vld [vmem:[%s1856_s4 + $0x30] sm:$0xff]  ;;  %v703_v3 = vld [vmem:[%s1856_s4 + $0x38] sm:$0xff]  ;;  %v704_v5 = vld [vmem:[%s1856_s4 + $0x40] sm:$0xff] }
  0x1d   :  { %1177 = vmatprep.mubr.msk.f32.mxu0 %vm61_vm1, %v35_v41  ;;  %1397 = vmatprep.subr.bf16.mxu0 %v1396_v60  ;;  %v1408_v4 = vpack.c.bf16 %v703_v3, %v702_v2  ;;  %v705_v6 = vld [vmem:[%s1856_s4 + $0x48] sm:$0xff]  ;;  %v706_v8 = vld [vmem:[%s1856_s4 + $0x50] sm:$0xff]  ;;  %v707_v9 = vld [vmem:[%s1856_s4 + $0x58] sm:$0xff] }
  0x1e   :  { %1379 = vmatpush3.bf16.msra.mxu1 %v1376_v36  ;;  %1399 = vmatpush3.bf16.msra.mxu0 %v1396_v60  ;;  %v1412_v7 = vpack.c.bf16 %v705_v6, %v704_v5  ;;  %v1416_v10 = vpack.c.bf16 %v707_v9, %v706_v8  ;;  %v708_v11 = vld [vmem:[%s1856_s4 + $0x60] sm:$0xff]  ;;  %v709_v12 = vld [vmem:[%s1856_s4 + $0x68] sm:$0xff] }
  0x1f   :  { %1381 = vmatprep.subr.bf16.mxu1 %v1380_v43  ;;  %1199 = vmatmul.mubr.msk.f32.gmra.mrb[12].mxu1 %vm61_vm1, %v50_v47  ;;  %v1420_v13 = vpack.c.bf16 %v709_v12, %v708_v11  ;;  %v1714_v14 = vld [vmem:[%s1854_s2] ss:$0 sm:$0xff] }
  0x20   :  { %1178 = vmatmul.mubr.msk.f32.gmra.mrb[14].mxu0 %vm61_vm1, %v36_v46  ;;  %1201 = vmatprep.mubr.msk.f32.mxu1 %vm61_vm1, %v51_v48 }
  0x21   :  { %1401 = vmatprep.subr.bf16.mxu0 %v1400_v62 }
  0x22   :  { %1383 = vmatpush3.bf16.msra.mxu1 %v1380_v43  ;;  %1403 = vmatpush3.bf16.msra.mxu0 %v1400_v62 }
  0x23   :  { %1385 = vmatprep.subr.bf16.mxu1 %v1384_v49  ;;  %1202 = vmatmul.mubr.msk.f32.gmra.mrb[14].mxu1 %vm61_vm1, %v52_v52 }
  0x24   :  { %1405 = vmatprep.subr.bf16.mxu0 %v1404_v1 }
  0x26   :  { %1387 = vmatpush3.bf16.msra.mxu1 %v1384_v49  ;;  %1407 = vmatpush3.bf16.msra.mxu0 %v1404_v1 }
  0x27   :  { %1389 = vmatprep.subr.bf16.mxu1 %v1388_v53  ;;  %1409 = vmatprep.subr.bf16.mxu0 %v1408_v4 }
  0x2a   :  { %1391 = vmatpush3.bf16.msra.mxu1 %v1388_v53  ;;  %1411 = vmatpush3.bf16.msra.mxu0 %v1408_v4 }
  0x2b   :  { %1393 = vmatprep.subr.bf16.mxu1 %v1392_v56  ;;  %1413 = vmatprep.subr.bf16.mxu0 %v1412_v7 }
  0x2e   :  { %1395 = vmatpush3.bf16.msra.mxu1 %v1392_v56  ;;  %1415 = vmatpush3.bf16.msra.mxu0 %v1412_v7 }
  0x2f   :  { %1417 = vmatprep.subr.bf16.mxu0 %v1416_v10 }
  0x32   :  { %1419 = vmatpush3.bf16.msra.mxu0 %v1416_v10 }
  0x33   :  { %1421 = vmatprep.subr.bf16.mxu0 %v1420_v13 }
  0x36   :  { %1423 = vmatpush3.bf16.msra.mxu0 %v1420_v13 }
  0xd7   :  { %v1158_v15 = vpop.f32.mrb[0].mxu0 }
  0xd8   :  { %v234_v16 = vadd.f32 %v1158_v15, %v1714_v14  ;;  %v228_v17 = vpop.f32.mrb[1].mxu0 }
  0xd9   :  { %v229_v18 = vadd.f32 %v1714_v14, %v228_v17  ;;  %v1718_v21 = vpop.f32.mrb[0].mxu1 }
  0xda   :  { %v388_v22 = vmax.f32 %v234_v16, 0.0  ;;  %v308_v25 = vpop.f32.mrb[1].mxu1 }
  0xdb   :  { %v387_v19 = vmax.f32 %v229_v18, 0.0  ;;  %v1161_v20 = vpop.f32.mrb[2].mxu0  ;;  %v309_v5 = vadd.f32 %v1714_v14, %v308_v25  ;;  %v314_v18 = vadd.f32 %v1718_v21, %v1714_v14 }
  0xdc   :  { %v244_v23 = vadd.f32 %v1161_v20, %v1714_v14  ;;  %v238_v24 = vpop.f32.mrb[3].mxu0 }
  0xdd   :  { %v239_v26 = vadd.f32 %v1714_v14, %v238_v24  ;;  %1236 = vmatprep.mubr.f32.mxu1 %v387_v19  ;;  %v1722_v29 = vpop.f32.mrb[2].mxu1  ;;  %v403_v13 = vmax.f32 %v309_v5, 0.0 }
  0xde   :  { %1237 = vmatmul.mubr.f32.vlgmr.msra.gmra.mrb[16].mxu1 %v388_v22  ;;  %v390_v30 = vmax.f32 %v244_v23, 0.0  ;;  %v318_v33 = vpop.f32.mrb[3].mxu1  ;;  %v404_v23 = vmax.f32 %v314_v18, 0.0  ;;  %v324_v24 = vadd.f32 %v1722_v29, %v1714_v14 }
  0xdf   :  { %v389_v27 = vmax.f32 %v239_v26, 0.0  ;;  %v1164_v28 = vpop.f32.mrb[4].mxu0  ;;  %v319_v15 = vadd.f32 %v1714_v14, %v318_v33 }
  0xe0   :  { %v254_v31 = vadd.f32 %v1164_v28, %v1714_v14  ;;  %v248_v32 = vpop.f32.mrb[5].mxu0 }
  0xe1   :  { %v249_v34 = vadd.f32 %v1714_v14, %v248_v32  ;;  %1239 = vmatprep.mubr.f32.mxu1 %v389_v27  ;;  %v1726_v37 = vpop.f32.mrb[4].mxu1  ;;  %v405_v20 = vmax.f32 %v319_v15, 0.0  ;;  %v406_v27 = vmax.f32 %v324_v24, 0.0 }
  0xe2   :  { %1240 = vmatmul.mubr.f32.gmra.mrb[18].mxu1 %v390_v30  ;;  %v392_v38 = vmax.f32 %v254_v31, 0.0  ;;  %v328_v41 = vpop.f32.mrb[5].mxu1  ;;  %v334_v21 = vadd.f32 %v1726_v37, %v1714_v14 }
  0xe3   :  { %v391_v35 = vmax.f32 %v249_v34, 0.0  ;;  %v1167_v36 = vpop.f32.mrb[6].mxu0  ;;  %v329_v22 = vadd.f32 %v1714_v14, %v328_v41 }
  0xe4   :  { %v264_v39 = vadd.f32 %v1167_v36, %v1714_v14  ;;  %v258_v40 = vpop.f32.mrb[7].mxu0  ;;  %v408_v31 = vmax.f32 %v334_v21, 0.0 }
  0xe5   :  { %v259_v42 = vadd.f32 %v1714_v14, %v258_v40  ;;  %1242 = vmatprep.mubr.f32.mxu1 %v391_v35  ;;  %v407_v25 = vmax.f32 %v329_v22, 0.0 }
  0xe6   :  { %1243 = vmatmul.mubr.f32.gmra.mrb[20].mxu1 %v392_v38  ;;  %v1730_v45 = vpop.f32.mrb[6].mxu1  ;;  %v394_v46 = vmax.f32 %v264_v39, 0.0 }
  0xe7   :  { %v393_v43 = vmax.f32 %v259_v42, 0.0  ;;  %v1170_v44 = vpop.f32.mrb[8].mxu0  ;;  %v338_v49 = vpop.f32.mrb[7].mxu1  ;;  %v344_v32 = vadd.f32 %v1730_v45, %v1714_v14 }
  0xe8   :  { %v274_v47 = vadd.f32 %v1170_v44, %v1714_v14  ;;  %v268_v48 = vpop.f32.mrb[9].mxu0  ;;  %v339_v26 = vadd.f32 %v1714_v14, %v338_v49  ;;  %v711_v49 = vld [vmem:[%s1856_s4 + $0x78] sm:$0xff] }
  0xe9   :  { %v269_v50 = vadd.f32 %v1714_v14, %v268_v48  ;;  %1245 = vmatprep.mubr.f32.mxu1 %v393_v43  ;;  %v410_v34 = vmax.f32 %v344_v32, 0.0  ;;  %v710_v48 = vld [vmem:[%s1856_s4 + $0x70] sm:$0xff] }
  0xea   :  { %1246 = vmatmul.mubr.f32.gmra.mrb[22].mxu1 %v394_v46  ;;  %v1194_v53 = vpop.f32.mrb[8].mxu1  ;;  %v396_v54 = vmax.f32 %v274_v47, 0.0  ;;  %v409_v28 = vmax.f32 %v339_v26, 0.0 }
  0xeb   :  { %v395_v51 = vmax.f32 %v269_v50, 0.0  ;;  %v1173_v52 = vpop.f32.mrb[10].mxu0  ;;  %v348_v57 = vpop.f32.mrb[9].mxu1  ;;  %v354_v35 = vadd.f32 %v1194_v53, %v1714_v14  ;;  %v1424_v50 = vpack.c.bf16 %v711_v49, %v710_v48 }
  0xec   :  { %v284_v55 = vadd.f32 %v1173_v52, %v1714_v14  ;;  %v278_v56 = vpop.f32.mrb[11].mxu0  ;;  %v349_v30 = vadd.f32 %v1714_v14, %v348_v57 }
  0xed   :  { %v279_v58 = vadd.f32 %v1714_v14, %v278_v56  ;;  %1248 = vmatprep.mubr.f32.mxu1 %v395_v51  ;;  %v412_v38 = vmax.f32 %v354_v35, 0.0  ;;  %1425 = vmatprep.subr.bf16.mxu0 %v1424_v50  ;;  %v1769_v51 = vld [vmem:[%s1854_s2 + $0x1] ss:$0 sm:$0xff] }
  0xee   :  { %1249 = vmatmul.mubr.f32.gmra.mrb[24].mxu1 %v396_v54  ;;  %v1197_v61 = vpop.f32.mrb[10].mxu1  ;;  %v398_v62 = vmax.f32 %v284_v55, 0.0  ;;  %v411_v29 = vmax.f32 %v349_v30, 0.0  ;;  %1427 = vmatpush3.bf16.msra.mxu0 %v1424_v50 }
  0xef   :  { %v397_v59 = vmax.f32 %v279_v58, 0.0  ;;  %v1176_v60 = vpop.f32.mrb[12].mxu0  ;;  %v358_v1 = vpop.f32.mrb[11].mxu1  ;;  %v364_v39 = vadd.f32 %v1197_v61, %v1714_v14 }
  0xf0   :  { %v294_v63 = vadd.f32 %v1176_v60, %v1714_v14  ;;  %v288_v0 = vpop.f32.mrb[13].mxu0  ;;  %v359_v33 = vadd.f32 %v1714_v14, %v358_v1 }
  0xf1   :  { %v289_v2 = vadd.f32 %v1714_v14, %v288_v0  ;;  %1251 = vmatprep.mubr.f32.mxu1 %v397_v59  ;;  %v414_v42 = vmax.f32 %v364_v39, 0.0 }
  0xf2   :  { %1252 = vmatmul.mubr.f32.gmra.mrb[26].mxu1 %v398_v62  ;;  %v1200_v6 = vpop.f32.mrb[12].mxu1  ;;  %v400_v7 = vmax.f32 %v294_v63, 0.0  ;;  %v413_v36 = vmax.f32 %v359_v33, 0.0 }
  0xf3   :  { %v399_v3 = vmax.f32 %v289_v2, 0.0  ;;  %v1179_v4 = vpop.f32.mrb[14].mxu0  ;;  %v368_v10 = vpop.f32.mrb[13].mxu1  ;;  %v374_v43 = vadd.f32 %v1200_v6, %v1714_v14 }
  0xf4   :  { %v304_v8 = vadd.f32 %v1179_v4, %v1714_v14  ;;  %v298_v9 = vpop.f32.mrb[15].mxu0  ;;  %v369_v37 = vadd.f32 %v1714_v14, %v368_v10 }
  0xf5   :  { %v299_v11 = vadd.f32 %v1714_v14, %v298_v9  ;;  %1254 = vmatprep.mubr.f32.mxu1 %v399_v3  ;;  %v416_v45 = vmax.f32 %v374_v43, 0.0 }
  0xf6   :  { %1255 = vmatmul.mubr.f32.gmra.mrb[28].mxu1 %v400_v7  ;;  %v1203_v16 = vpop.f32.mrb[14].mxu1  ;;  %v402_v17 = vmax.f32 %v304_v8, 0.0  ;;  %v415_v40 = vmax.f32 %v369_v37, 0.0 }
  0xf7   :  { %v401_v12 = vmax.f32 %v299_v11, 0.0  ;;  %v378_v19 = vpop.f32.mrb[15].mxu1  ;;  %v384_v46 = vadd.f32 %v1203_v16, %v1714_v14 }
  0xf8   :  { %v379_v41 = vadd.f32 %v1714_v14, %v378_v19 }
  0xf9   :  { %1257 = vmatprep.mubr.f32.mxu1 %v401_v12  ;;  %v418_v47 = vmax.f32 %v384_v46, 0.0 }
  0xfa   :  { %1258 = vmatmul.mubr.f32.gmra.mrb[30].mxu1 %v402_v17  ;;  %v417_v44 = vmax.f32 %v379_v41, 0.0 }
  0xfb   :  { %1260 = vmatprep.mubr.f32.mxu1 %v403_v13 }
  0xfe   :  { %1261 = vmatmul.mubr.f32.gmra.mrb[32].mxu1 %v404_v23 }
  0xff   :  { %1263 = vmatprep.mubr.f32.mxu1 %v405_v20 }
 0x102   :  { %1264 = vmatmul.mubr.f32.gmra.mrb[34].mxu1 %v406_v27 }
 0x103   :  { %1266 = vmatprep.mubr.f32.mxu1 %v407_v25 }
 0x106   :  { %1267 = vmatmul.mubr.f32.gmra.mrb[36].mxu1 %v408_v31 }
 0x107   :  { %1269 = vmatprep.mubr.f32.mxu1 %v409_v28 }
 0x10a   :  { %1270 = vmatmul.mubr.f32.gmra.mrb[38].mxu1 %v410_v34 }
 0x10b   :  { %1272 = vmatprep.mubr.f32.mxu1 %v411_v29 }
 0x10e   :  { %1273 = vmatmul.mubr.f32.gmra.mrb[40].mxu1 %v412_v38 }
 0x10f   :  { %1275 = vmatprep.mubr.f32.mxu1 %v413_v36 }
 0x112   :  { %1276 = vmatmul.mubr.f32.gmra.mrb[42].mxu1 %v414_v42 }
 0x113   :  { %1278 = vmatprep.mubr.f32.mxu1 %v415_v40 }
 0x116   :  { %1279 = vmatmul.mubr.f32.gmra.mrb[44].mxu1 %v416_v45 }
 0x117   :  { %1281 = vmatprep.mubr.f32.mxu1 %v417_v44 }
 0x11a   :  { %1282 = vmatmul.mubr.f32.gmra.mrb[46].mxu1 %v418_v47 }
 0x1b1   :  { %v1238_v14 = vpop.f32.mrb[16].mxu1 }
 0x1b2   :  { %v511_v52 = vadd.f32 %v1238_v14, %v1769_v51  ;;  %v505_v53 = vpop.f32.mrb[17].mxu1 }
 0x1b3   :  { %v506_v54 = vadd.f32 %v1769_v51, %v505_v53 }
 0x1b4   :  { %v665_v57 = vmax.f32 %v511_v52, 0.0 }
 0x1b5   :  { %v664_v55 = vmax.f32 %v506_v54, 0.0  ;;  %v1241_v56 = vpop.f32.mrb[18].mxu1 }
 0x1b6   :  { %v521_v58 = vadd.f32 %v1241_v56, %v1769_v51  ;;  %v515_v59 = vpop.f32.mrb[19].mxu1 }
 0x1b7   :  { %v516_v60 = vadd.f32 %v1769_v51, %v515_v59  ;;  %1316 = vmatprep.mubr.f32.mxu0 %v664_v55 }
 0x1b8   :  { %1317 = vmatmul.mubr.f32.vlgmr.msra.gmra.mrb[16].mxu0 %v665_v57  ;;  %v667_v63 = vmax.f32 %v521_v58, 0.0 }
 0x1b9   :  { %v666_v61 = vmax.f32 %v516_v60, 0.0  ;;  %v1244_v62 = vpop.f32.mrb[20].mxu1 }
 0x1ba   :  { %v531_v0 = vadd.f32 %v1244_v62, %v1769_v51  ;;  %v525_v1 = vpop.f32.mrb[21].mxu1 }
 0x1bb   :  { %v526_v2 = vadd.f32 %v1769_v51, %v525_v1  ;;  %1319 = vmatprep.mubr.f32.mxu0 %v666_v61 }
 0x1bc   :  { %1320 = vmatmul.mubr.f32.gmra.mrb[18].mxu0 %v667_v63  ;;  %v669_v5 = vmax.f32 %v531_v0, 0.0 }
 0x1bd   :  { %v668_v3 = vmax.f32 %v526_v2, 0.0  ;;  %v1247_v4 = vpop.f32.mrb[22].mxu1 }
 0x1be   :  { %v541_v6 = vadd.f32 %v1247_v4, %v1769_v51  ;;  %v535_v7 = vpop.f32.mrb[23].mxu1 }
 0x1bf   :  { %v536_v8 = vadd.f32 %v1769_v51, %v535_v7  ;;  %1322 = vmatprep.mubr.f32.mxu0 %v668_v3 }
 0x1c0   :  { %1323 = vmatmul.mubr.f32.gmra.mrb[20].mxu0 %v669_v5  ;;  %v671_v11 = vmax.f32 %v541_v6, 0.0 }
 0x1c1   :  { %v670_v9 = vmax.f32 %v536_v8, 0.0  ;;  %v1250_v10 = vpop.f32.mrb[24].mxu1 }
 0x1c2   :  { %v551_v12 = vadd.f32 %v1250_v10, %v1769_v51  ;;  %v545_v13 = vpop.f32.mrb[25].mxu1 }
 0x1c3   :  { %v546_v15 = vadd.f32 %v1769_v51, %v545_v13  ;;  %1325 = vmatprep.mubr.f32.mxu0 %v670_v9 }
 0x1c4   :  { %1326 = vmatmul.mubr.f32.gmra.mrb[22].mxu0 %v671_v11  ;;  %v673_v18 = vmax.f32 %v551_v12, 0.0 }
 0x1c5   :  { %v672_v16 = vmax.f32 %v546_v15, 0.0  ;;  %v1253_v17 = vpop.f32.mrb[26].mxu1 }
 0x1c6   :  { %v561_v19 = vadd.f32 %v1253_v17, %v1769_v51  ;;  %v555_v20 = vpop.f32.mrb[27].mxu1 }
 0x1c7   :  { %v556_v22 = vadd.f32 %v1769_v51, %v555_v20  ;;  %1328 = vmatprep.mubr.f32.mxu0 %v672_v16 }
 0x1c8   :  { %1329 = vmatmul.mubr.f32.gmra.mrb[24].mxu0 %v673_v18  ;;  %v675_v25 = vmax.f32 %v561_v19, 0.0 }
 0x1c9   :  { %v674_v23 = vmax.f32 %v556_v22, 0.0  ;;  %v1256_v24 = vpop.f32.mrb[28].mxu1  ;;  %v1806_v22 = vld [vmem:[%s1854_s2 + $0x2] ss:$0 sm:$0xff]  ;;  %s1457_s2 = smov [#allocation2]  }
 0x1ca   :  { %v571_v26 = vadd.f32 %v1256_v24, %v1769_v51  ;;  %v565_v27 = vpop.f32.mrb[29].mxu1  ;;  %s978_s19 = sshll.u32 %s1457_s2, 4  ;;  %s979_s19 = int_to_ptr.vmem [resolvable:$true] %s978_s19 }
 0x1cb   :  { %v566_v21 = vadd.f32 %v1769_v51, %v565_v27  ;;  %1331 = vmatprep.mubr.f32.mxu0 %v674_v23  ;;  %s1433_s20 = scalar_lea.vmem %s979_s19, 4096  ;;  %p1438_p1 = scmp.lt.s32.totalorder %s979_s19, %s979_s19 }
 0x1cc   :  { %1332 = vmatmul.mubr.f32.gmra.mrb[26].mxu0 %v675_v25  ;;  %v677_v31 = vmax.f32 %v571_v26, 0.0  ;;  %p1434_p0 = scmp.ne.s32.totalorder %s979_s19, %s1433_s20  ;;  %p1439_p2 = scmp.lt.s32.totalorder %s1433_s20, %s1433_s20 }
 0x1cd   :  { %v676_v28 = vmax.f32 %v566_v21, 0.0  ;;  %v1259_v30 = vpop.f32.mrb[30].mxu1 }
 0x1ce   :  { %v581_v32 = vadd.f32 %v1259_v30, %v1769_v51  ;;  %v575_v29 = vpop.f32.mrb[31].mxu1  ;;  %p1440_p3 = por %p1439_p2, %p1438_p1 }
 0x1cf   :  { %v576_v33 = vadd.f32 %v1769_v51, %v575_v29  ;;  %1334 = vmatprep.mubr.f32.mxu0 %v676_v28 }
 0x1d0   :  { %1335 = vmatmul.mubr.f32.gmra.mrb[28].mxu0 %v677_v31  ;;  %v679_v36 = vmax.f32 %v581_v32, 0.0  ;;  %p1441_p4 = pnand %p1440_p3, %p1434_p0 }
 0x1d1   :  { %v678_v34 = vmax.f32 %v576_v33, 0.0  ;;  %v1262_v35 = vpop.f32.mrb[32].mxu1 }
 0x1d2   :  { %v591_v37 = vadd.f32 %v1262_v35, %v1769_v51  ;;  %v585_v38 = vpop.f32.mrb[33].mxu1 }
 0x1d3   :  { %v586_v39 = vadd.f32 %v1769_v51, %v585_v38  ;;  %1337 = vmatprep.mubr.f32.mxu0 %v678_v34 }
 0x1d4   :  { %1338 = vmatmul.mubr.f32.gmra.mrb[30].mxu0 %v679_v36  ;;  %v681_v42 = vmax.f32 %v591_v37, 0.0 }
 0x1d5   :  { %v680_v40 = vmax.f32 %v586_v39, 0.0  ;;  %v1265_v41 = vpop.f32.mrb[34].mxu1 }
 0x1d6   :  { %v601_v43 = vadd.f32 %v1265_v41, %v1769_v51  ;;  %v595_v44 = vpop.f32.mrb[35].mxu1 }
 0x1d7   :  { %v596_v45 = vadd.f32 %v1769_v51, %v595_v44  ;;  %1340 = vmatprep.mubr.f32.mxu0 %v680_v40 }
 0x1d8   :  { %1341 = vmatmul.mubr.f32.gmra.mrb[32].mxu0 %v681_v42  ;;  %v683_v48 = vmax.f32 %v601_v43, 0.0 }
 0x1d9   :  { %v682_v46 = vmax.f32 %v596_v45, 0.0  ;;  %v1268_v47 = vpop.f32.mrb[36].mxu1 }
 0x1da   :  { %v611_v49 = vadd.f32 %v1268_v47, %v1769_v51  ;;  %v605_v50 = vpop.f32.mrb[37].mxu1 }
 0x1db   :  { %v606_v14 = vadd.f32 %v1769_v51, %v605_v50  ;;  %1343 = vmatprep.mubr.f32.mxu0 %v682_v46 }
 0x1dc   :  { %1344 = vmatmul.mubr.f32.gmra.mrb[34].mxu0 %v683_v48  ;;  %v685_v54 = vmax.f32 %v611_v49, 0.0 }
 0x1dd   :  { %v684_v52 = vmax.f32 %v606_v14, 0.0  ;;  %v1271_v53 = vpop.f32.mrb[38].mxu1 }
 0x1de   :  { %v621_v55 = vadd.f32 %v1271_v53, %v1769_v51  ;;  %v615_v56 = vpop.f32.mrb[39].mxu1 }
 0x1df   :  { %v616_v57 = vadd.f32 %v1769_v51, %v615_v56  ;;  %1346 = vmatprep.mubr.f32.mxu0 %v684_v52 }
 0x1e0   :  { %1347 = vmatmul.mubr.f32.gmra.mrb[36].mxu0 %v685_v54  ;;  %v687_v60 = vmax.f32 %v621_v55, 0.0 }
 0x1e1   :  { %v686_v58 = vmax.f32 %v616_v57, 0.0  ;;  %v1274_v59 = vpop.f32.mrb[40].mxu1 }
 0x1e2   :  { %v631_v61 = vadd.f32 %v1274_v59, %v1769_v51  ;;  %v625_v62 = vpop.f32.mrb[41].mxu1 }
 0x1e3   :  { %v626_v63 = vadd.f32 %v1769_v51, %v625_v62  ;;  %1349 = vmatprep.mubr.f32.mxu0 %v686_v58 }
 0x1e4   :  { %1350 = vmatmul.mubr.f32.gmra.mrb[38].mxu0 %v687_v60  ;;  %v689_v2 = vmax.f32 %v631_v61, 0.0 }
 0x1e5   :  { %v688_v0 = vmax.f32 %v626_v63, 0.0  ;;  %v1277_v1 = vpop.f32.mrb[42].mxu1 }
 0x1e6   :  { %v641_v3 = vadd.f32 %v1277_v1, %v1769_v51  ;;  %v635_v4 = vpop.f32.mrb[43].mxu1 }
 0x1e7   :  { %v636_v5 = vadd.f32 %v1769_v51, %v635_v4  ;;  %1352 = vmatprep.mubr.f32.mxu0 %v688_v0 }
 0x1e8   :  { %1353 = vmatmul.mubr.f32.gmra.mrb[40].mxu0 %v689_v2  ;;  %v691_v8 = vmax.f32 %v641_v3, 0.0 }
 0x1e9   :  { %v690_v6 = vmax.f32 %v636_v5, 0.0  ;;  %v1280_v7 = vpop.f32.mrb[44].mxu1 }
 0x1ea   :  { %v651_v9 = vadd.f32 %v1280_v7, %v1769_v51  ;;  %v645_v10 = vpop.f32.mrb[45].mxu1 }
 0x1eb   :  { %v646_v11 = vadd.f32 %v1769_v51, %v645_v10  ;;  %1355 = vmatprep.mubr.f32.mxu0 %v690_v6 }
 0x1ec   :  { %1356 = vmatmul.mubr.f32.gmra.mrb[42].mxu0 %v691_v8  ;;  %v693_v15 = vmax.f32 %v651_v9, 0.0 }
 0x1ed   :  { %v692_v12 = vmax.f32 %v646_v11, 0.0  ;;  %v1283_v13 = vpop.f32.mrb[46].mxu1 }
 0x1ee   :  { %v661_v16 = vadd.f32 %v1283_v13, %v1769_v51  ;;  %v655_v17 = vpop.f32.mrb[47].mxu1 }
 0x1ef   :  { %v656_v18 = vadd.f32 %v1769_v51, %v655_v17  ;;  %1358 = vmatprep.mubr.f32.mxu0 %v692_v12 }
 0x1f0   :  { %1359 = vmatmul.mubr.f32.gmra.mrb[44].mxu0 %v693_v15  ;;  %v695_v20 = vmax.f32 %v661_v16, 0.0 }
 0x1f1   :  { %v694_v19 = vmax.f32 %v656_v18, 0.0 }
 0x1f3   :  { %1361 = vmatprep.mubr.f32.mxu0 %v694_v19 }
 0x1f4   :  { %1362 = vmatmul.mubr.f32.gmra.mrb[46].mxu0 %v695_v20 }
 0x28b   :  { %v1318_v23 = vpop.f32.mrb[16].mxu0 }
 0x28c   :  { %v788_v24 = vadd.f32 %v1318_v23, %v1806_v22  ;;  %v782_v25 = vpop.f32.mrb[17].mxu0 }
 0x28d   :  { %v783_v26 = vadd.f32 %v1806_v22, %v782_v25 }
 0x28e   :  { %942 = vst [vmem:[#allocation2 + $0x8] sm:$0xff] %v788_v24 }
 0x28f   :  { %941 = vst [vmem:[#allocation2] sm:$0xff] %v783_v26  ;;  %v1321_v51 = vpop.f32.mrb[18].mxu0 }
 0x290   :  { %v798_v27 = vadd.f32 %v1321_v51, %v1806_v22  ;;  %v792_v21 = vpop.f32.mrb[19].mxu0 }
 0x291   :  { %v793_v28 = vadd.f32 %v1806_v22, %v792_v21 }
 0x292   :  { %944 = vst [vmem:[#allocation2 + $0x18] sm:$0xff] %v798_v27 }
 0x293   :  { %943 = vst [vmem:[#allocation2 + $0x10] sm:$0xff] %v793_v28  ;;  %v1324_v30 = vpop.f32.mrb[20].mxu0 }
 0x294   :  { %v808_v31 = vadd.f32 %v1324_v30, %v1806_v22  ;;  %v802_v32 = vpop.f32.mrb[21].mxu0 }
 0x295   :  { %v803_v29 = vadd.f32 %v1806_v22, %v802_v32 }
 0x296   :  { %946 = vst [vmem:[#allocation2 + $0x28] sm:$0xff] %v808_v31 }
 0x297   :  { %945 = vst [vmem:[#allocation2 + $0x20] sm:$0xff] %v803_v29  ;;  %v1327_v33 = vpop.f32.mrb[22].mxu0 }
 0x298   :  { %v818_v34 = vadd.f32 %v1327_v33, %v1806_v22  ;;  %v812_v35 = vpop.f32.mrb[23].mxu0 }
 0x299   :  { %v813_v36 = vadd.f32 %v1806_v22, %v812_v35 }
 0x29a   :  { %948 = vst [vmem:[#allocation2 + $0x38] sm:$0xff] %v818_v34 }
 0x29b   :  { %947 = vst [vmem:[#allocation2 + $0x30] sm:$0xff] %v813_v36  ;;  %v1330_v37 = vpop.f32.mrb[24].mxu0 }
 0x29c   :  { %v828_v38 = vadd.f32 %v1330_v37, %v1806_v22  ;;  %v822_v39 = vpop.f32.mrb[25].mxu0 }
 0x29d   :  { %v823_v40 = vadd.f32 %v1806_v22, %v822_v39 }
 0x29e   :  { %950 = vst [vmem:[#allocation2 + $0x48] sm:$0xff] %v828_v38 }
 0x29f   :  { %949 = vst [vmem:[#allocation2 + $0x40] sm:$0xff] %v823_v40  ;;  %v1333_v41 = vpop.f32.mrb[26].mxu0 }
 0x2a0   :  { %v838_v42 = vadd.f32 %v1333_v41, %v1806_v22  ;;  %v832_v43 = vpop.f32.mrb[27].mxu0 }
 0x2a1   :  { %v833_v44 = vadd.f32 %v1806_v22, %v832_v43 }
 0x2a2   :  { %952 = vst [vmem:[#allocation2 + $0x58] sm:$0xff] %v838_v42 }
 0x2a3   :  { %951 = vst [vmem:[#allocation2 + $0x50] sm:$0xff] %v833_v44  ;;  %v1336_v45 = vpop.f32.mrb[28].mxu0 }
 0x2a4   :  { %v848_v46 = vadd.f32 %v1336_v45, %v1806_v22  ;;  %v842_v47 = vpop.f32.mrb[29].mxu0 }
 0x2a5   :  { %v843_v48 = vadd.f32 %v1806_v22, %v842_v47 }
 0x2a6   :  { %954 = vst [vmem:[#allocation2 + $0x68] sm:$0xff] %v848_v46 }
 0x2a7   :  { %953 = vst [vmem:[#allocation2 + $0x60] sm:$0xff] %v843_v48  ;;  %v1339_v49 = vpop.f32.mrb[30].mxu0 }
 0x2a8   :  { %v858_v50 = vadd.f32 %v1339_v49, %v1806_v22  ;;  %v852_v14 = vpop.f32.mrb[31].mxu0 }
 0x2a9   :  { %v853_v52 = vadd.f32 %v1806_v22, %v852_v14 }
 0x2aa   :  { %956 = vst [vmem:[#allocation2 + $0x78] sm:$0xff] %v858_v50 }
 0x2ab   :  { %955 = vst [vmem:[#allocation2 + $0x70] sm:$0xff] %v853_v52  ;;  %v1342_v53 = vpop.f32.mrb[32].mxu0 }
 0x2ac   :  { %v868_v54 = vadd.f32 %v1342_v53, %v1806_v22  ;;  %v862_v55 = vpop.f32.mrb[33].mxu0 }
 0x2ad   :  { %v863_v56 = vadd.f32 %v1806_v22, %v862_v55 }
 0x2ae   :  { %958 = vst [vmem:[#allocation2 + $0x88] sm:$0xff] %v868_v54 }
 0x2af   :  { %957 = vst [vmem:[#allocation2 + $0x80] sm:$0xff] %v863_v56  ;;  %v1345_v57 = vpop.f32.mrb[34].mxu0 }
 0x2b0   :  { %v878_v58 = vadd.f32 %v1345_v57, %v1806_v22  ;;  %v872_v59 = vpop.f32.mrb[35].mxu0 }
 0x2b1   :  { %v873_v60 = vadd.f32 %v1806_v22, %v872_v59 }
 0x2b2   :  { %960 = vst [vmem:[#allocation2 + $0x98] sm:$0xff] %v878_v58 }
 0x2b3   :  { %959 = vst [vmem:[#allocation2 + $0x90] sm:$0xff] %v873_v60  ;;  %v1348_v61 = vpop.f32.mrb[36].mxu0 }
 0x2b4   :  { %v888_v62 = vadd.f32 %v1348_v61, %v1806_v22  ;;  %v882_v63 = vpop.f32.mrb[37].mxu0 }
 0x2b5   :  { %v883_v0 = vadd.f32 %v1806_v22, %v882_v63 }
 0x2b6   :  { %962 = vst [vmem:[#allocation2 + $0xa8] sm:$0xff] %v888_v62 }
 0x2b7   :  { %961 = vst [vmem:[#allocation2 + $0xa0] sm:$0xff] %v883_v0  ;;  %v1351_v1 = vpop.f32.mrb[38].mxu0 }
 0x2b8   :  { %v898_v2 = vadd.f32 %v1351_v1, %v1806_v22  ;;  %v892_v3 = vpop.f32.mrb[39].mxu0 }
 0x2b9   :  { %v893_v4 = vadd.f32 %v1806_v22, %v892_v3 }
 0x2ba   :  { %964 = vst [vmem:[#allocation2 + $0xb8] sm:$0xff] %v898_v2 }
 0x2bb   :  { %963 = vst [vmem:[#allocation2 + $0xb0] sm:$0xff] %v893_v4  ;;  %v1354_v5 = vpop.f32.mrb[40].mxu0 }
 0x2bc   :  { %v908_v6 = vadd.f32 %v1354_v5, %v1806_v22  ;;  %v902_v7 = vpop.f32.mrb[41].mxu0 }
 0x2bd   :  { %v903_v8 = vadd.f32 %v1806_v22, %v902_v7 }
 0x2be   :  { %966 = vst [vmem:[#allocation2 + $0xc8] sm:$0xff] %v908_v6 }
 0x2bf   :  { %965 = vst [vmem:[#allocation2 + $0xc0] sm:$0xff] %v903_v8  ;;  %v1357_v9 = vpop.f32.mrb[42].mxu0 }
 0x2c0   :  { %v918_v10 = vadd.f32 %v1357_v9, %v1806_v22  ;;  %v912_v11 = vpop.f32.mrb[43].mxu0 }
 0x2c1   :  { %v913_v12 = vadd.f32 %v1806_v22, %v912_v11 }
 0x2c2   :  { %968 = vst [vmem:[#allocation2 + $0xd8] sm:$0xff] %v918_v10 }
 0x2c3   :  { %967 = vst [vmem:[#allocation2 + $0xd0] sm:$0xff] %v913_v12  ;;  %v1360_v13 = vpop.f32.mrb[44].mxu0 }
 0x2c4   :  { %v928_v15 = vadd.f32 %v1360_v13, %v1806_v22  ;;  %v922_v16 = vpop.f32.mrb[45].mxu0 }
 0x2c5   :  { %v923_v17 = vadd.f32 %v1806_v22, %v922_v16 }
 0x2c6   :  { %970 = vst [vmem:[#allocation2 + $0xe8] sm:$0xff] %v928_v15 }
 0x2c7   :  { %969 = vst [vmem:[#allocation2 + $0xe0] sm:$0xff] %v923_v17  ;;  %v1363_v18 = vpop.f32.mrb[46].mxu0 }
 0x2c8   :  { %v938_v19 = vadd.f32 %v1363_v18, %v1806_v22  ;;  %v932_v20 = vpop.f32.mrb[47].mxu0 }
 0x2c9   :  { %v933_v23 = vadd.f32 %v1806_v22, %v932_v20 }
 0x2ca   :  { %972 = vst [vmem:[#allocation2 + $0xf8] sm:$0xff] %v938_v19 }
 0x2cb   :  { %971 = vst [vmem:[#allocation2 + $0xf0] sm:$0xff] %v933_v23 }
 0x2cc   :  { %1444 = shalt.err (!%p1441_p4)
}
 0x2cd   :  { %s1445_s23 = scalar_lea.hbm %s1857_s5, 4096 }
 0x2ce   :  { %p1446_p5 = scmp.ne.s32.totalorder %s1857_s5, %s1445_s23  ;;  %p1449_p6 = scmp.lt.u32.totalorder %s1445_s23, %s1857_s5 }
 0x2d0   :  { %p1451_p7 = pnand %p1449_p6, %p1446_p5 }
 0x2d2   :  { %1454 = shalt.err (!%p1451_p7)
}
 0x2d3   :  { %s1458_s27 = smov 128   ;;  %s1459_s28 = smov 8  }
 0x2d4   :  { %984 = dma.vmem_to_hbm [thread:$0]  %s979_s19, 4096, %s1857_s5, [#allocation3], %s1458_s27, %s1458_s27, %s1459_s28  }
 0x2d5   :  { %1455 = dma.done.wait [#allocation3], 4096  }
 0x2d6   :  { %1456 = vsyncadd [#allocation3], 4294963200 }
 0x2d7   :  { %988 = vsyncpa [#allocation3], 1 }

</bundles_post_ra>
